<compile_context>
chip_gen: v7x
topology: tpu7x:2x2x1
jax: 0.10.0
libtpu: 0.0.40
codegen_flags: <defaults>
</compile_context>

<pallas_src>
import math

import jax
import jax.numpy as jnp
from jax.experimental import pallas as pl
from jax.experimental.pallas import tpu as pltpu


# ------------------------------ Pallas kernel -------------------------------

def _generator_kernel(x_ref, wt_ref, b_ref, o_ref, m_sc, l_sc):
    # x:  [tm, K]  (any float dtype; cast to bf16 for the MXU)
    # wt: [K, tn]  bf16 (pre-transposed weight tile, streams along j)
    # b:  [1, tn]  f32
    # o:  [tm, N]  resident output block across the column axis
    # m_sc/l_sc: [tm, 1] f32 online-logsumexp state
    j = pl.program_id(1)
    nj = pl.num_programs(1)

    @pl.when(j == 0)
    def _():
        m_sc[...] = jnp.full(m_sc.shape, -jnp.inf, m_sc.dtype)
        l_sc[...] = jnp.zeros(l_sc.shape, l_sc.dtype)

    x_bf = x_ref[...].astype(jnp.bfloat16)
    logits = jnp.dot(x_bf, wt_ref[...], preferred_element_type=jnp.float32)
    logits = logits + b_ref[...].astype(jnp.float32)

    # online logsumexp update (numerically stable)
    m_prev = m_sc[...]
    m_new = jnp.maximum(m_prev, jnp.max(logits, axis=-1, keepdims=True))
    l_sc[...] = l_sc[...] * jnp.exp(m_prev - m_new) + jnp.sum(
        jnp.exp(logits - m_new), axis=-1, keepdims=True)
    m_sc[...] = m_new

    # stash raw logits into the resident output block; normalize at the end
    tn = logits.shape[-1]
    start = pl.multiple_of(j * tn, tn)
    o_ref[:, pl.ds(start, tn)] = logits.astype(o_ref.dtype)

    @pl.when(j == nj - 1)
    def _():
        lse = m_sc[...] + jnp.log(l_sc[...])
        o_ref[...] = (o_ref[...] - lse).astype(o_ref.dtype)


# ------------------------------- tile picking -------------------------------

def _round_up(x, m):
    return ((x + m - 1) // m) * m


def _pick_tiles(M, K, N, budget_bytes=12 << 20):
    """VMEM-budget-driven (tm, tn).  tn must divide N so the online softmax
    never sees padded garbage columns; tm may leave a ragged last row block
    (row-wise op => safe, writes are masked)."""
    tn = N
    if N % 128 == 0:
        for cand in (512, 384, 256, 128):
            if N % cand == 0:
                tn = cand
                break

    def footprint(tm):
        x_b = 2 * tm * K * 4          # streamed activations (double buffered)
        w_b = 2 * K * tn * 2          # streamed bf16 weight tile
        b_b = 2 * tn * 4              # bias tile
        o_b = 2 * tm * N * 4          # resident output block
        scr = 2 * tm * 4              # (m, l) scratch
        return x_b + w_b + b_b + o_b + scr

    tm = min(512, _round_up(max(M, 1), 8))
    while tm > 8 and footprint(tm) > budget_bytes:
        tm //= 2
    return tm, tn


# --------------------------------- wrapper -----------------------------------

def generator_forward(params, x):
    """log_softmax(x @ W^T + b, axis=-1) as one fused Pallas kernel."""
    wt = params["w_t"]                      # [K, N] bf16
    b = params["b"]                         # [1, N] f32
    K = x.shape[-1]
    N = wt.shape[1]
    lead = x.shape[:-1]
    M = math.prod(lead)

    x2d = x.reshape(M, K)                   # no dtype pass; kernel casts to bf16
    out_dtype = x2d.dtype
    tm, tn = _pick_tiles(M, K, N)
    grid = (pl.cdiv(M, tm), pl.cdiv(N, tn))

    cost = pl.CostEstimate(
        flops=2 * M * K * N + 6 * M * N,
        transcendentals=2 * M * N,          # exp (+ log) in the online LSE
        bytes_accessed=(M * K * x2d.dtype.itemsize + K * N * 2 + N * 4
                        + M * N * jnp.dtype(out_dtype).itemsize),
    )

    out = pl.pallas_call(
        _generator_kernel,
        out_shape=jax.ShapeDtypeStruct((M, N), out_dtype),
        grid=grid,
        in_specs=[
            pl.BlockSpec((tm, K), lambda i, j: (i, 0)),   # rows resident across j
            pl.BlockSpec((K, tn), lambda i, j: (0, j)),   # bf16 weight streams
            pl.BlockSpec((1, tn), lambda i, j: (0, j)),   # bias streams with weight
        ],
        out_specs=pl.BlockSpec((tm, N), lambda i, j: (i, 0)),  # resident across j
        scratch_shapes=[
            pltpu.VMEM((tm, 1), jnp.float32),             # running max
            pltpu.VMEM((tm, 1), jnp.float32),             # running sum(exp)
        ],
        compiler_params=pltpu.CompilerParams(
            dimension_semantics=("parallel", "arbitrary")),
        cost_estimate=cost,
    )(x2d, wt, b)

    return out.reshape(*lead, N)


# --------------------------- parameter construction -------------------------

def init_generator_params(key, d_model, output_dim):
    # nn.Linear default init: uniform(-1/sqrt(fan_in), 1/sqrt(fan_in))
    kw, kb = jax.random.split(key)
    bound = 1.0 / math.sqrt(d_model)
    w = jax.random.uniform(kw, (output_dim, d_model), jnp.float32, -bound, bound)
    b = jax.random.uniform(kb, (output_dim,), jnp.float32, -bound, bound)
    # pre-transpose PyTorch-layout [out, in] -> [in, out] ONCE, store as bf16
    return {"w_t": w.T.astype(jnp.bfloat16), "b": b.reshape(1, output_dim)}


# ----------------------------------- main ------------------------------------

if __name__ == "__main__":
    d_model, output_dim = 32, 256           # 2 column tiles of 128 -> exercises N-tiling
    B, S = 2, 8

    root = jax.random.PRNGKey(0)
    k_params, k_x = jax.random.split(root)

    params = init_generator_params(k_params, d_model, output_dim)
    x = jax.random.normal(k_x, (B, S, d_model), jnp.float32)

    fwd = jax.jit(generator_forward)
    out = fwd(params, x)
    jax.block_until_ready(out)

    # reference: same bf16 matmul / f32-accumulation path, pure JAX
    logits_ref = jnp.dot(x.reshape(-1, d_model).astype(jnp.bfloat16),
                         params["w_t"], preferred_element_type=jnp.float32)
    logits_ref = logits_ref + params["b"]
    ref = jax.nn.log_softmax(logits_ref, axis=-1).reshape(B, S, output_dim)

    assert out.shape == (B, S, output_dim)
    assert bool(jnp.all(jnp.isfinite(out)))
    assert jnp.allclose(out.astype(jnp.float32), ref, atol=5e-3, rtol=5e-3), \
        float(jnp.max(jnp.abs(out.astype(jnp.float32) - ref)))
    # each row must exponentiate to a probability distribution
    assert jnp.allclose(jnp.sum(jnp.exp(out.astype(jnp.float32)), axis=-1),
                        1.0, atol=1e-3)

    print("KERNEL_OK")
</pallas_src>

<mosaic_0001>
module attributes {stable_mosaic.version = 11 : i64} {
  func.func @_generator_kernel(%arg0: i32, %arg1: i32, %arg2: memref<16x32xf32, #tpu.memory_space<vmem>>, %arg3: memref<32x256xbf16, #tpu.memory_space<vmem>>, %arg4: memref<1x256xf32, #tpu.memory_space<vmem>>, %arg5: memref<16x256xf32, #tpu.memory_space<vmem>>, %arg6: memref<16x1xf32, #tpu.memory_space<vmem>>, %arg7: memref<16x1xf32, #tpu.memory_space<vmem>>) attributes {dimension_semantics = [#tpu.dimension_semantics<parallel>, #tpu.dimension_semantics<arbitrary>], iteration_bounds = array<i64: 1, 1>, scalar_prefetch = 0 : i64, scratch_operands = 2 : i64, tpu.core_type = #tpu.core_type<tc>, window_params = [{transform_indices = @transform_0, window_bounds = array<i64: 16, 32>}, {transform_indices = @transform_1, window_bounds = array<i64: 32, 256>}, {transform_indices = @transform_2, window_bounds = array<i64: 1, 256>}, {transform_indices = @transform_3, window_bounds = array<i64: 16, 256>}]} {
    %c0_i32 = arith.constant 0 : i32
    %0 = arith.cmpi eq, %arg1, %c0_i32 : i32
    %1 = arith.extui %0 : i1 to i32
    %c0_i32_0 = arith.constant 0 : i32
    %2 = arith.cmpi ne, %1, %c0_i32_0 : i32
    scf.if %2 {
      %cst_19 = arith.constant 0xFF800000 : f32
      %33 = vector.broadcast %cst_19 : f32 to vector<16x1xf32>
      %c0_20 = arith.constant 0 : index
      %c0_21 = arith.constant 0 : index
      %34 = vector.load %arg6[%c0_20, %c0_21] : memref<16x1xf32, #tpu.memory_space<vmem>>, vector<16x1xf32>
      tpu.vector_store %arg6[%c0_20, %c0_21], %33 {strides = array<i32>} : memref<16x1xf32, #tpu.memory_space<vmem>>, vector<16x1xf32>,
      %cst_22 = arith.constant 0.000000e+00 : f32
      %35 = vector.broadcast %cst_22 : f32 to vector<16x1xf32>
      %c0_23 = arith.constant 0 : index
      %c0_24 = arith.constant 0 : index
      %36 = vector.load %arg7[%c0_23, %c0_24] : memref<16x1xf32, #tpu.memory_space<vmem>>, vector<16x1xf32>
      tpu.vector_store %arg7[%c0_23, %c0_24], %35 {strides = array<i32>} : memref<16x1xf32, #tpu.memory_space<vmem>>, vector<16x1xf32>,
    } else {
    }
    %c0 = arith.constant 0 : index
    %c0_1 = arith.constant 0 : index
    %3 = vector.load %arg2[%c0, %c0_1] : memref<16x32xf32, #tpu.memory_space<vmem>>, vector<16x32xf32>
    %4 = arith.truncf %3 : vector<16x32xf32> to vector<16x32xbf16>
    %c0_2 = arith.constant 0 : index
    %c0_3 = arith.constant 0 : index
    %5 = vector.load %arg3[%c0_2, %c0_3] : memref<32x256xbf16, #tpu.memory_space<vmem>>, vector<32x256xbf16>
    %cst = arith.constant dense<0.000000e+00> : vector<16x256xf32>
    %6 = tpu.matmul %4, %5, %cst {dimension_numbers = #tpu.dot_dimension_numbers<[1], [0], [0], [1], [0, 0, 1, 1], [], []>} : vector<16x32xbf16>, vector<32x256xbf16>, vector<16x256xf32> -> vector<16x256xf32>
    %c0_4 = arith.constant 0 : index
    %c0_5 = arith.constant 0 : index
    %7 = vector.load %arg4[%c0_4, %c0_5] : memref<1x256xf32, #tpu.memory_space<vmem>>, vector<1x256xf32>
    %8 = vector.broadcast %7 : vector<1x256xf32> to vector<16x256xf32>
    %9 = arith.addf %6, %8 : vector<16x256xf32>
    %c0_6 = arith.constant 0 : index
    %c0_7 = arith.constant 0 : index
    %10 = vector.load %arg6[%c0_6, %c0_7] : memref<16x1xf32, #tpu.memory_space<vmem>>, vector<16x1xf32>
    %cst_8 = arith.constant dense<0xFF800000> : vector<16xf32>
    %11 = vector.multi_reduction <maximumf>, %9, %cst_8 [1] : vector<16x256xf32> to vector<16xf32>
    %12 = vector.shape_cast %11 : vector<16xf32> to vector<16x1xf32>
    %13 = arith.maximumf %10, %12 : vector<16x1xf32>
    %c0_9 = arith.constant 0 : index
    %c0_10 = arith.constant 0 : index
    %14 = vector.load %arg7[%c0_9, %c0_10] : memref<16x1xf32, #tpu.memory_space<vmem>>, vector<16x1xf32>
    %15 = arith.subf %10, %13 : vector<16x1xf32>
    %16 = math.exp %15 : vector<16x1xf32>
    %17 = arith.mulf %14, %16 : vector<16x1xf32>
    %18 = vector.broadcast %13 : vector<16x1xf32> to vector<16x256xf32>
    %19 = arith.subf %9, %18 : vector<16x256xf32>
    %20 = math.exp %19 : vector<16x256xf32>
    %cst_11 = arith.constant dense<0.000000e+00> : vector<16xf32>
    %21 = vector.multi_reduction <add>, %20, %cst_11 [1] : vector<16x256xf32> to vector<16xf32>
    %22 = vector.shape_cast %21 : vector<16xf32> to vector<16x1xf32>
    %23 = arith.addf %17, %22 : vector<16x1xf32>
    %c0_12 = arith.constant 0 : index
    %c0_13 = arith.constant 0 : index
    %24 = vector.load %arg7[%c0_12, %c0_13] : memref<16x1xf32, #tpu.memory_space<vmem>>, vector<16x1xf32>
    tpu.vector_store %arg7[%c0_12, %c0_13], %23 {strides = array<i32>} : memref<16x1xf32, #tpu.memory_space<vmem>>, vector<16x1xf32>,
    %c0_14 = arith.constant 0 : index
    %c0_15 = arith.constant 0 : index
    %25 = vector.load %arg6[%c0_14, %c0_15] : memref<16x1xf32, #tpu.memory_space<vmem>>, vector<16x1xf32>
    tpu.vector_store %arg6[%c0_14, %c0_15], %13 {strides = array<i32>} : memref<16x1xf32, #tpu.memory_space<vmem>>, vector<16x1xf32>,
    %c256_i32 = arith.constant 256 : i32
    %26 = arith.muli %arg1, %c256_i32 : i32
    %27 = tpu.assume_multiple %26, 256 : i32
    %c0_16 = arith.constant 0 : index
    %28 = arith.index_cast %27 : i32 to index
    %29 = vector.load %arg5[%c0_16, %28] : memref<16x256xf32, #tpu.memory_space<vmem>>, vector<16x256xf32>
    tpu.vector_store %arg5[%c0_16, %28], %9 {strides = array<i32>} : memref<16x256xf32, #tpu.memory_space<vmem>>, vector<16x256xf32>,
    %c0_i32_17 = arith.constant 0 : i32
    %30 = arith.cmpi eq, %arg1, %c0_i32_17 : i32
    %31 = arith.extui %30 : i1 to i32
    %c0_i32_18 = arith.constant 0 : i32
    %32 = arith.cmpi ne, %31, %c0_i32_18 : i32
    scf.if %32 {
      %c0_19 = arith.constant 0 : index
      %c0_20 = arith.constant 0 : index
      %33 = vector.load %arg6[%c0_19, %c0_20] : memref<16x1xf32, #tpu.memory_space<vmem>>, vector<16x1xf32>
      %c0_21 = arith.constant 0 : index
      %c0_22 = arith.constant 0 : index
      %34 = vector.load %arg7[%c0_21, %c0_22] : memref<16x1xf32, #tpu.memory_space<vmem>>, vector<16x1xf32>
      %35 = math.log %34 : vector<16x1xf32>
      %36 = arith.addf %33, %35 : vector<16x1xf32>
      %c0_23 = arith.constant 0 : index
      %c0_24 = arith.constant 0 : index
      %37 = vector.load %arg5[%c0_23, %c0_24] : memref<16x256xf32, #tpu.memory_space<vmem>>, vector<16x256xf32>
      %38 = vector.broadcast %36 : vector<16x1xf32> to vector<16x256xf32>
      %39 = arith.subf %37, %38 : vector<16x256xf32>
      %c0_25 = arith.constant 0 : index
      %c0_26 = arith.constant 0 : index
      %40 = vector.load %arg5[%c0_25, %c0_26] : memref<16x256xf32, #tpu.memory_space<vmem>>, vector<16x256xf32>
      tpu.vector_store %arg5[%c0_25, %c0_26], %39 {strides = array<i32>} : memref<16x256xf32, #tpu.memory_space<vmem>>, vector<16x256xf32>,
    } else {
    }
    return
  }
  func.func @transform_0(%arg0: i32, %arg1: i32) -> (i32, i32) {
    %c0_i32 = arith.constant 0 : i32
    %c0_i32_0 = arith.constant 0 : i32
    return %arg0, %c0_i32 : i32, i32
  }
  func.func @transform_1(%arg0: i32, %arg1: i32) -> (i32, i32) {
    %c0_i32 = arith.constant 0 : i32
    %c0_i32_0 = arith.constant 0 : i32
    return %c0_i32, %arg1 : i32, i32
  }
  func.func @transform_2(%arg0: i32, %arg1: i32) -> (i32, i32) {
    %c0_i32 = arith.constant 0 : i32
    %c0_i32_0 = arith.constant 0 : i32
    return %c0_i32, %arg1 : i32, i32
  }
  func.func @transform_3(%arg0: i32, %arg1: i32) -> (i32, i32) {
    %c0_i32 = arith.constant 0 : i32
    %c0_i32_0 = arith.constant 0 : i32
    return %arg0, %c0_i32 : i32, i32
  }
}

</mosaic_0001>

<bundles_post_ra>
// kernel: generator_forward.1
= control target key start
LH: loop header
LB: loop body
LE: loop exit
PB: predicated region body
PF: predicated region fallthrough
CT: control target
= control target key end

     0   :  { %8 = vsyncpa [#allocation5], 0  ;;  %s466_s0 = inlined_call_operand.hbm [shape: f32[16,32], index: 0, kind: input, shape index: {}]   ;;  %s467_s1 = inlined_call_operand.hbm [shape: bf16[32,256], index: 1, kind: input, shape index: {}]   ;;  %s468_s2 = inlined_call_operand.vmem [shape: f32[1,256], index: 2, kind: input, shape index: {}]   ;;  %s469_s3 = inlined_call_operand.hbm [shape: f32[16,256], index: 3, kind: output, shape index: {}]  }
   0x1   :  { %9 = vsyncpa [#allocation8], 0 }
   0x2   :  { %10 = vsyncpa [#allocation6], 0  ;;  %s369_s12 = smov [#allocation4]   ;;  %s297_s16 = scalar_lea.hbm %s466_s0, 256 }
   0x3   :  { %s16_s13 = sshll.u32 %s369_s12, 4  ;;  %p298_p0 = scmp.ne.s32.totalorder %s466_s0, %s297_s16  ;;  %s17_s13 = int_to_ptr.vmem [resolvable:$true] %s16_s13 }
   0x4   :  { %p301_p1 = scmp.lt.u32.totalorder %s297_s16, %s466_s0 }
   0x6   :  { %p303_p2 = pnand %p301_p1, %p298_p0 }
   0x8   :  { %306 = shalt.err (!%p303_p2)
}
   0x9   :  { %s307_s21 = scalar_lea.vmem %s17_s13, 256  ;;  %p312_p4 = scmp.lt.s32.totalorder %s17_s13, %s17_s13 }
   0xa   :  { %p308_p3 = scmp.ne.s32.totalorder %s17_s13, %s307_s21  ;;  %p313_p5 = scmp.lt.s32.totalorder %s307_s21, %s307_s21 }
   0xc   :  { %p314_p6 = por %p313_p5, %p312_p4 }
   0xe   :  { %p315_p7 = pnand %p314_p6, %p308_p3 }
  0x10   :  { %318 = shalt.err (!%p315_p7)
}
  0x11   :  { %s370_s22 = smov 128   ;;  %s371_s23 = smov 8  }
  0x12   :  { %22 = dma.hbm_to_vmem [thread:$0]  %s466_s0, 256, %s17_s13, [#allocation5], %s370_s22, %s370_s22, %s371_s23  }
  0x13   :  { %s372_s26 = smov [#allocation7]   ;;  %s319_s30 = scalar_lea.hbm %s467_s1, 512 }
  0x14   :  { %s28_s27 = sshll.u32 %s372_s26, 4  ;;  %p320_p8 = scmp.ne.s32.totalorder %s467_s1, %s319_s30  ;;  %s29_s27 = int_to_ptr.vmem [resolvable:$true] %s28_s27 }
  0x15   :  { %p323_p9 = scmp.lt.u32.totalorder %s319_s30, %s467_s1 }
  0x17   :  { %p325_p10 = pnand %p323_p9, %p320_p8 }
  0x19   :  { %328 = shalt.err (!%p325_p10)
}
  0x1a   :  { %s329_s8 = scalar_lea.vmem %s29_s27, 512  ;;  %p334_p12 = scmp.lt.s32.totalorder %s29_s27, %s29_s27 }
  0x1b   :  { %p330_p11 = scmp.ne.s32.totalorder %s29_s27, %s329_s8  ;;  %p335_p13 = scmp.lt.s32.totalorder %s329_s8, %s329_s8 }
  0x1d   :  { %p336_p0 = por %p335_p13, %p334_p12 }
  0x1f   :  { %p337_p1 = pnand %p336_p0, %p330_p11 }
  0x21   :  { %340 = shalt.err (!%p337_p1)
}
  0x22   :  { %34 = dma.hbm_to_vmem [thread:$0]  %s467_s1, 512, %s29_s27, [#allocation8], %s370_s22, %s370_s22, %s371_s23  }
  0x23   :  { %363 = dma.done.wait [#allocation5], 256  }
  0x24   :  { %364 = vsyncadd [#allocation5], 4294967040 }
  0x25   :  { %365 = dma.done.wait [#allocation8], 512  }
  0x26   :  { %366 = vsyncadd [#allocation8], 4294966784  ;;  %v373_v0 = vmov 0   ;;  %v275_v1 = vld [vmem:[#allocation7 + $0x4] ss:$8 sps:$4 sm:$0xff]   ;;  %v53_v5 = vld [vmem:[#allocation4] sm:$0xff]  ;;  %v62_v9 = vlaneseq }
  0x27   :  { %128 = vmatprep.mubr.bf16.mxu0 %v373_v0  ;;  %273 = vset.pattern.permute.xlu1 %v373_v0  ;;  %v277_v2 = vld [vmem:[#allocation7] ss:$8 sps:$4 sm:$0xff]   ;;  %v278_v3 = vld [vmem:[#allocation7 + $0x14] ss:$8 sps:$4 sm:$0xff]   ;;  %v280_v4 = vld [vmem:[#allocation7 + $0x10] ss:$8 sps:$4 sm:$0xff]  }
  0x28   :  { %274 = vset.pattern.permute.xlu0 %v373_v0  ;;  %96 = vmatprep.subr.bf16.mxu0 %v275_v1  ;;  %v54_v6 = vld [vmem:[#allocation4 + $0x8] sm:$0xff]  ;;  %vm92_vm0 = vcmask 261120   ;;  %vm48_vm1 = vcmask 7168   ;;  %v374_v8 = vmov -inf   ;;  %v63_v10 = vshrl.u32 %v62_v9, 7 }
  0x29   :  { %97 = vmatpush1.bf16.msra.mxu0 %v277_v2  ;;  %v55_v7 = vpack.c.bf16 %v54_v6, %v53_v5  ;;  %49 = vst.msk [vmem:[#allocation2] sm:$0xff] %vm48_vm1, %v374_v8  ;;  %50 = vst.msk [vmem:[#allocation2 + $0x8] sm:$0xff] %vm48_vm1, %v374_v8  ;;  %v60_v12 = vld [vmem:[%s468_s2] sm:$0x3]  ;;  %v375_v26 = vmov 0.0   ;;  %s376_s2 = smov [#allocation9]  }
  0x2a   :  { %98 = vmatprep.subr.bf16.mxu0 %v278_v3  ;;  %v64_v11 = vsub.s32 0, %v63_v10  ;;  %v68_v13 = vsub.s32 1, %v63_v10  ;;  %51 = vst.msk [vmem:[#allocation3] sm:$0xff] %vm48_vm1, %v375_v26  ;;  %52 = vst.msk [vmem:[#allocation3 + $0x8] sm:$0xff] %vm48_vm1, %v375_v26  ;;  %s243_s11 = sshll.u32 %s376_s2, 4  ;;  %s244_s11 = int_to_ptr.vmem [resolvable:$true] %s243_s11 }
  0x2b   :  { %s341_s12 = scalar_lea.vmem %s244_s11, 512  ;;  %p346_p3 = scmp.lt.s32.totalorder %s244_s11, %s244_s11 }
  0x2c   :  { %v65_v14 = vrot.slane %v60_v12, %v64_v11  ;;  %v69_v15 = vrot.slane %v60_v12, %v68_v13  ;;  %p342_p2 = scmp.ne.s32.totalorder %s244_s11, %s341_s12  ;;  %p347_p4 = scmp.lt.s32.totalorder %s341_s12, %s341_s12 }
  0x2d   :  { %99 = vmatpush1.bf16.msra.mxu0 %v280_v4 }
  0x2e   :  { %p348_p5 = por %p347_p4, %p346_p3 }
  0x30   :  { %262 = vmatmul.mubr.msk.bf16.vlgmr.msra.gmra.mrb[0].mxu0 %vm92_vm0, %v55_v7  ;;  %v139_v27 = vld [vmem:[#allocation2] sm:$0xff]  ;;  %v140_v30 = vld [vmem:[#allocation2 + $0x8] sm:$0xff]  ;;  %p349_p6 = pnand %p348_p5, %p342_p2 }
  0x31   :  { %v149_v54 = vld [vmem:[#allocation3] sm:$0xff]  ;;  %v150_v58 = vld [vmem:[#allocation3 + $0x8] sm:$0xff] }
 0x103   :  { %v130_v16 = vpop.f32.mrb[0].mxu0 }
 0x104   :  { %v428_v17 = vadd.f32 %v130_v16, %v65_v14  ;;  %v132_v18 = vpop.f32.mrb[1].mxu0 }
 0x105   :  { %v430_v19 = vadd.f32 %v132_v18, %v69_v15  ;;  %v134_v20 = vpop.f32.mrb[2].mxu0 }
 0x106   :  { %v136_v21 = vpop.f32.mrb[3].mxu0  ;;  %v432_v22 = vadd.f32 %v134_v20, %v65_v14 }
 0x107   :  { %v434_v23 = vadd.f32 %v136_v21, %v69_v15  ;;  %v141_v24 = vmax.f32 %v428_v17, %v430_v19 }
 0x109   :  { %142 = vmax.xlane.f32.xlu0 %v141_v24  ;;  %v144_v25 = vmax.f32 %v432_v22, %v434_v23 }
 0x10d   :  { %145 = vmax.xlane.f32.xlu0 %v144_v25 }
 0x196   :  { %v143_v28 = vpop.xlane.xlu0 %142 }
 0x197   :  { %v147_v29 = vmax.f32 %v139_v27, %v143_v28 }
 0x199   :  { %v151_v31 = vsub.f32 %v139_v27, %v147_v29  ;;  %192 = vst.msk [vmem:[#allocation2] sm:$0xff] %vm48_vm1, %v147_v29  ;;  %161 = vperm.xlu1 %273, %v147_v29  }
 0x19a   :  { %v146_v32 = vpop.xlane.xlu0 %145 }
 0x19b   :  { %v148_v33 = vmax.f32 %v140_v30, %v146_v32  ;;  %v153_v51 = vmul.f32 1.442695, %v151_v31 }
 0x19d   :  { %v152_v34 = vsub.f32 %v140_v30, %v148_v33  ;;  %193 = vst.msk [vmem:[#allocation2 + $0x8] sm:$0xff] %vm48_vm1, %v148_v33  ;;  %166 = vperm.xlu1 %273, %v148_v33  }
 0x19f   :  { %v155_v52 = vmul.f32 1.442695, %v152_v34 }
 0x1a0   :  { %v206_v3 = vld [vmem:[#allocation2] sm:$0xff] }
 0x1a4   :  { %v207_v7 = vld [vmem:[#allocation2 + $0x8] sm:$0xff] }
 0x218   :  { %v162_v35 = vpop.permute.xlu1 %161 }
 0x219   :  { %v169_v36 = vsub.f32 %v428_v17, %v162_v35  ;;  %v170_v37 = vsub.f32 %v430_v19, %v162_v35 }
 0x21b   :  { %v173_v38 = vmul.f32 1.442695, %v169_v36  ;;  %v175_v39 = vmul.f32 1.442695, %v170_v37 }
 0x21c   :  { %v167_v40 = vpop.permute.xlu1 %166 }
 0x21d   :  { %281 = vpow2.f32 %v173_v38  ;;  %v171_v41 = vsub.f32 %v432_v22, %v167_v40  ;;  %v172_v42 = vsub.f32 %v434_v23, %v167_v40 }
 0x21e   :  { %283 = vpow2.f32 %v175_v39 }
 0x21f   :  { %v177_v43 = vmul.f32 1.442695, %v171_v41  ;;  %v179_v44 = vmul.f32 1.442695, %v172_v42 }
 0x221   :  { %285 = vpow2.f32 %v177_v43 }
 0x222   :  { %287 = vpow2.f32 %v179_v44 }
 0x223   :  { %289 = vpow2.f32 %v153_v51 }
 0x224   :  { %291 = vpow2.f32 %v155_v52 }
 0x227   :  { %v282_v45 = vpop.eup %281 }
 0x228   :  { %v284_v46 = vpop.eup %283 }
 0x229   :  { %v181_v47 = vadd.f32 %v284_v46, %v282_v45 }
 0x22b   :  { %v286_v48 = vpop.eup %285  ;;  %182 = vadd.xlane.f32.xlu0 %v181_v47 }
 0x22c   :  { %v288_v49 = vpop.eup %287 }
 0x22d   :  { %v184_v50 = vadd.f32 %v288_v49, %v286_v48  ;;  %v290_v53 = vpop.eup %289 }
 0x22e   :  { %v157_v55 = vmul.f32 %v290_v53, %v149_v54  ;;  %v292_v56 = vpop.eup %291 }
 0x22f   :  { %185 = vadd.xlane.f32.xlu1 %v184_v50  ;;  %v158_v60 = vmul.f32 %v292_v56, %v150_v58 }
 0x2b8   :  { %v183_v57 = vpop.xlane.xlu0 %182 }
 0x2b9   :  { %v187_v59 = vadd.f32 %v183_v57, %v157_v55 }
 0x2bb   :  { %190 = vst.msk [vmem:[#allocation3] sm:$0xff] %vm48_vm1, %v187_v59 }
 0x2bc   :  { %v186_v61 = vpop.xlane.xlu1 %185 }
 0x2bd   :  { %v188_v62 = vadd.f32 %v186_v61, %v158_v60 }
 0x2bf   :  { %191 = vst.msk [vmem:[#allocation3 + $0x8] sm:$0xff] %vm48_vm1, %v188_v62 }
 0x2c2   :  { %v208_v63 = vld [vmem:[#allocation3] sm:$0xff] }
 0x2c3   :  { %293 = vlog2.f32 %v208_v63 }
 0x2c6   :  { %v209_v0 = vld [vmem:[#allocation3 + $0x8] sm:$0xff] }
 0x2c7   :  { %295 = vlog2.f32 %v209_v0 }
 0x2cd   :  { %v294_v1 = vpop.eup %293 }
 0x2ce   :  { %v211_v2 = vmul.f32 0.6931472, %v294_v1 }
 0x2d0   :  { %v214_v4 = vadd.f32 %v211_v2, %v206_v3 }
 0x2d1   :  { %v296_v5 = vpop.eup %295 }
 0x2d2   :  { %222 = vperm.xlu0 %274, %v214_v4   ;;  %v213_v6 = vmul.f32 0.6931472, %v296_v5 }
 0x2d4   :  { %v215_v8 = vadd.f32 %v213_v6, %v207_v7 }
 0x2d6   :  { %227 = vperm.xlu1 %273, %v215_v8  }
 0x351   :  { %v223_v9 = vpop.permute.xlu0 %222 }
 0x352   :  { %v230_v10 = vsub.f32 %v428_v17, %v223_v9  ;;  %v231_v11 = vsub.f32 %v430_v19, %v223_v9 }
 0x354   :  { %234 = vst [vmem:[#allocation9] sm:$0xff] %v230_v10  ;;  %235 = vst [vmem:[#allocation9 + $0x8] sm:$0xff] %v231_v11 }
 0x355   :  { %v228_v12 = vpop.permute.xlu1 %227 }
 0x356   :  { %v232_v13 = vsub.f32 %v432_v22, %v228_v12  ;;  %v233_v14 = vsub.f32 %v434_v23, %v228_v12 }
 0x358   :  { %236 = vst [vmem:[#allocation9 + $0x10] sm:$0xff] %v232_v13  ;;  %237 = vst [vmem:[#allocation9 + $0x18] sm:$0xff] %v233_v14 }
 0x359   :  { %352 = shalt.err (!%p349_p6)
}
 0x35a   :  { %s353_s15 = scalar_lea.hbm %s469_s3, 512 }
 0x35b   :  { %p354_p7 = scmp.ne.s32.totalorder %s469_s3, %s353_s15  ;;  %p357_p8 = scmp.lt.u32.totalorder %s353_s15, %s469_s3 }
 0x35d   :  { %p359_p9 = pnand %p357_p8, %p354_p7 }
 0x35f   :  { %362 = shalt.err (!%p359_p9)
}
 0x360   :  { %s377_s20 = smov 256   ;;  %s378_s21 = smov 16  }
 0x361   :  { %249 = dma.vmem_to_hbm [thread:$0]  %s244_s11, 512, %s469_s3, [#allocation6], %s377_s20, %s377_s20, %s378_s21  }
 0x362   :  { %367 = dma.done.wait [#allocation6], 512  }
 0x363   :  { %368 = vsyncadd [#allocation6], 4294966784 }
 0x364   :  { %253 = vsyncpa [#allocation5], 1 }
 0x365   :  { %254 = vsyncpa [#allocation8], 1 }
 0x366   :  { %255 = vsyncpa [#allocation6], 1 }

</bundles_post_ra>
